<compile_context>
chip_gen: v7x
topology: tpu7x:2x2x1
jax: 0.10.0
libtpu: 0.0.40
codegen_flags: <defaults>
</compile_context>

<pallas_src>
import functools

import numpy as np
import jax
import jax.numpy as jnp
from jax.experimental import pallas as pl
from jax.experimental.pallas import tpu as pltpu


def _round_up(x, m):
    return ((x + m - 1) // m) * m


# --------------------------------------------------------------------------- kernel
def _encoder_kernel(x_ref, w1_ref, b1_ref, w2_ref, b2_ref, wh_ref, bh_ref, out_ref,
                    *, belief_start, num_belief_states):
    f32 = jnp.float32

    def dot(x, w_ref):
        # Cast activations to the stored weight dtype (bf16 on the MXU-native path,
        # no-op for f32 weights); always accumulate in f32 on the MXU.
        return jnp.dot(x.astype(w_ref.dtype), w_ref[...], preferred_element_type=f32)

    # fc1 -> ReLU (one fused matmul over the packed [tile_b, K_pad] input slab)
    h1 = jnp.maximum(dot(x_ref[...], w1_ref) + b1_ref[...].astype(f32), 0.0)
    # fc2 -> ReLU
    h2 = jnp.maximum(dot(h1, w2_ref) + b2_ref[...].astype(f32), 0.0)
    # Packed heads: one lane-dense matmul -> [mean | logvar | belief_logits | zero pad]
    y = dot(h2, wh_ref) + bh_ref[...].astype(f32)

    # Belief-lane mask from a single (1, heads_pad) iota row; broadcasts over the tile.
    col = jax.lax.broadcasted_iota(jnp.int32, (1, y.shape[-1]), 1)
    belief_mask = (col >= belief_start) & (col < belief_start + num_belief_states)

    # Softmax over belief lanes only (masked lanes -> -1e30 in f32 -> exp underflows to
    # exactly 0, so the padded / mean / logvar lanes cannot leak into the distribution).
    logits = jnp.where(belief_mask, y, -1e30)
    m = jnp.max(logits, axis=-1, keepdims=True)
    p = jnp.exp(logits - m)
    belief = p / jnp.sum(p, axis=-1, keepdims=True)  # exact division

    # mean/logvar lanes keep their raw linear outputs; belief lanes get the softmax.
    out_ref[...] = jnp.where(belief_mask, belief, y).astype(out_ref.dtype)


# --------------------------------------------------------------------------- params
def init_params(key, action_dim, latent_dim, hidden_dim, num_agents, num_belief_states):
    """Torch-faithful init: xavier_normal_ weights ([in, out] layout), biases per spec."""
    max_in = num_belief_states + action_dim * num_agents + 1 + num_belief_states + latent_dim
    min_in = 1 + action_dim * num_agents + 1 + 1 + latent_dim

    ks = jax.random.split(key, 10)

    def xavier(k, fi, fo):
        return ((2.0 / (fi + fo)) ** 0.5) * jax.random.normal(k, (fi, fo), jnp.float32)

    def default_bias(k, fi, n):  # torch Linear default bias init
        bound = 1.0 / (fi ** 0.5)
        return jax.random.uniform(k, (n,), jnp.float32, -bound, bound)

    return {
        "w1_discrete": xavier(ks[0], max_in, hidden_dim),
        "b1_discrete": jnp.zeros((hidden_dim,), jnp.float32),
        "w1_continuous": xavier(ks[1], min_in, hidden_dim),
        "b1_continuous": jnp.zeros((hidden_dim,), jnp.float32),
        "w2": xavier(ks[2], hidden_dim, hidden_dim),
        "b2": default_bias(ks[3], hidden_dim, hidden_dim),
        "w_mean": xavier(ks[4], hidden_dim, latent_dim),
        "b_mean": default_bias(ks[5], hidden_dim, latent_dim),
        "w_logvar": xavier(ks[6], hidden_dim, latent_dim),
        "b_logvar": default_bias(ks[7], hidden_dim, latent_dim),
        "w_belief": xavier(ks[8], hidden_dim, num_belief_states),
        "b_belief": jnp.zeros((num_belief_states,), jnp.float32),
    }


def pack_params(params, hidden_dim, latent_dim, num_belief_states, action_dim, num_agents,
                matmul_dtype=jnp.bfloat16):
    """Pad hidden/head/input dims to 128, pack the three heads, pack fc1 per branch.

    matmul_dtype=jnp.bfloat16: MXU-native path on v6e/v7x (halves resident-weight VMEM).
    matmul_dtype=jnp.float32:  bit-exact f32 path; on v5e (no bf16 VALU, kernel is
    writeback/overhead-bound) benchmark this against bf16 — weights are VMEM-resident
    so the 2x weight size is a one-time DMA.  Biases stay f32 (all VPU math is f32).
    """
    h_pad = _round_up(hidden_dim, 128)
    heads = 2 * latent_dim + num_belief_states
    heads_pad = _round_up(heads, 128)

    def pad2(a, rows, cols):
        return jnp.pad(a, ((0, rows - a.shape[0]), (0, cols - a.shape[1])))

    def branch(w, b):
        k = w.shape[0]
        k_pad = _round_up(k, 128)
        return {"w1": pad2(w, k_pad, h_pad).astype(matmul_dtype),
                "b1": pad2(b[None, :], 1, h_pad).astype(jnp.float32),
                "k": k}

    w_heads = jnp.concatenate([params["w_mean"], params["w_logvar"], params["w_belief"]],
                              axis=1)
    b_heads = jnp.concatenate([params["b_mean"], params["b_logvar"], params["b_belief"]])

    return {
        "disc": branch(params["w1_discrete"], params["b1_discrete"]),
        "cont": branch(params["w1_continuous"], params["b1_continuous"]),
        "w2": pad2(params["w2"], h_pad, h_pad).astype(matmul_dtype),
        "b2": pad2(params["b2"][None, :], 1, h_pad).astype(jnp.float32),
        "w_heads": pad2(w_heads, h_pad, heads_pad).astype(matmul_dtype),
        "b_heads": pad2(b_heads[None, :], 1, heads_pad).astype(jnp.float32),
    }


# --------------------------------------------------------------------------- wrapper
def _normalize_inputs(signal, actions, reward, next_signal, current_latent):
    """Mirror the torch module's dim fixups."""
    signal = jnp.asarray(signal, jnp.float32)
    actions = jnp.asarray(actions, jnp.float32)
    next_signal = jnp.asarray(next_signal, jnp.float32)
    current_latent = jnp.asarray(current_latent, jnp.float32)
    if current_latent.ndim == 3:
        current_latent = jnp.squeeze(current_latent, axis=1)
    if signal.ndim == 1:
        signal = signal[None, :]
    if actions.ndim == 1:
        actions = actions[None, :]
    if isinstance(reward, (int, float)):
        reward = jnp.array([[reward]], dtype=jnp.float32)
    else:
        reward = jnp.asarray(reward, jnp.float32)
        if reward.ndim == 0:
            reward = reward[None, None]
        elif reward.ndim == 1:
            reward = reward[:, None]
    if current_latent.ndim == 1:
        current_latent = current_latent[None, :]
    return signal, actions, reward, next_signal, current_latent


def encoder_forward(signal, actions, reward, next_signal, current_latent, packed,
                    latent_dim, num_belief_states, *,
                    tile_b=1024,
                    out_dtype=jnp.float32,
                    vmem_limit_bytes=48 * 1024 * 1024,
                    single_buffer_weights=False):
    signal, actions, reward, next_signal, latent = _normalize_inputs(
        signal, actions, reward, next_signal, current_latent)

    is_continuous = (signal.shape[1] == 1 and next_signal.shape[1] == 1)  # static branch
    p1 = packed["cont"] if is_continuous else packed["disc"]

    # One lane-dense input slab: [signal | actions | reward | next_signal | latent].
    x = jnp.concatenate([signal, actions, reward, next_signal, latent], axis=1)
    assert x.shape[1] == p1["k"], (x.shape, p1["k"])
    k_pad = p1["w1"].shape[0]
    h_pad = packed["w2"].shape[0]
    heads_pad = packed["w_heads"].shape[1]

    B = x.shape[0]
    b_pad = _round_up(B, 8)                       # sublane alignment only, NOT tile_b
    x = jnp.pad(x, ((0, b_pad - B), (0, k_pad - x.shape[1])))

    # --- tile_b selection -----------------------------------------------------------
    tile_b = max(8, min(_round_up(tile_b, 8), b_pad))
    # v7x megacore: guarantee >= 2 batch tiles when the batch is big enough to split,
    # otherwise the second TensorCore idles.
    if b_pad >= 512 and pl.cdiv(b_pad, tile_b) < 2:
        tile_b = _round_up(pl.cdiv(b_pad, 2), 8)
    # Keep resident weights + double-buffered I/O tiles + f32 intermediates under budget.
    w_list = (p1["w1"], p1["b1"], packed["w2"], packed["b2"],
              packed["w_heads"], packed["b_heads"])
    w_bytes = sum(int(a.size) * a.dtype.itemsize for a in w_list)
    w_resident = w_bytes * (1 if single_buffer_weights else 2)
    out_isz = np.dtype(out_dtype).itemsize

    def est_vmem(tb):
        io = tb * k_pad * 4 * 2 + tb * heads_pad * out_isz * 2   # double-buffered in/out
        interm = tb * (2 * h_pad + 2 * heads_pad) * 4            # h1, h2, y, softmax temps
        return w_resident + io + interm

    while tile_b > 8 and est_vmem(tile_b) > int(0.75 * vmem_limit_bytes):
        tile_b = max(8, _round_up(tile_b // 2, 8))

    grid = (pl.cdiv(b_pad, tile_b),)   # tail tile may be partial; Pallas masks OOB rows

    def res_spec(shape):
        # Weights/biases are VMEM-resident (constant block index across the grid).
        # single_buffer_weights=True drops the dead second buffer (useful on v7x with
        # large hidden_dim).
        if single_buffer_weights:
            return pl.BlockSpec(shape, lambda i: (0, 0), pipeline_mode=pl.Buffered(1))
        return pl.BlockSpec(shape, lambda i: (0, 0))

    kernel = functools.partial(_encoder_kernel,
                               belief_start=2 * latent_dim,
                               num_belief_states=num_belief_states)

    flops = 2 * b_pad * (k_pad * h_pad + h_pad * h_pad + h_pad * heads_pad)
    bytes_accessed = (b_pad * k_pad * 4 + b_pad * heads_pad * out_isz + w_bytes)

    out = pl.pallas_call(
        kernel,
        out_shape=jax.ShapeDtypeStruct((b_pad, heads_pad), out_dtype),
        grid=grid,
        in_specs=[
            pl.BlockSpec((tile_b, k_pad), lambda i: (i, 0)),      # batch-tiled input slab
            res_spec(p1["w1"].shape), res_spec(p1["b1"].shape),
            res_spec(packed["w2"].shape), res_spec(packed["b2"].shape),
            res_spec(packed["w_heads"].shape), res_spec(packed["b_heads"].shape),
        ],
        out_specs=pl.BlockSpec((tile_b, heads_pad), lambda i: (i, 0)),
        compiler_params=pltpu.CompilerParams(
            dimension_semantics=("parallel",),        # shard batch tiles across TCs (v7x)
            vmem_limit_bytes=int(vmem_limit_bytes)),
        cost_estimate=pl.CostEstimate(
            flops=int(flops),
            transcendentals=int(b_pad * heads_pad),
            bytes_accessed=int(bytes_accessed)),
    )(x, p1["w1"], p1["b1"], packed["w2"], packed["b2"],
      packed["w_heads"], packed["b_heads"])

    mean = out[:B, :latent_dim]
    logvar = out[:B, latent_dim:2 * latent_dim]
    belief = out[:B, 2 * latent_dim:2 * latent_dim + num_belief_states]
    return mean, logvar, belief


# --------------------------------------------------------------------------- reference
def _reference_forward(signal, actions, reward, next_signal, latent, packed,
                       is_continuous, latent_dim, num_belief_states):
    """Pure-JAX reference using the same packed params (zero padding is exact)."""
    p1 = packed["cont"] if is_continuous else packed["disc"]
    f32 = jnp.float32
    x = jnp.concatenate([signal, actions, reward, next_signal, latent], axis=1)
    x = jnp.pad(x, ((0, 0), (0, p1["w1"].shape[0] - x.shape[1])))

    def dot(a, w):
        return jnp.dot(a.astype(w.dtype), w, preferred_element_type=f32)

    h1 = jnp.maximum(dot(x, p1["w1"]) + p1["b1"], 0.0)
    h2 = jnp.maximum(dot(h1, packed["w2"]) + packed["b2"], 0.0)
    y = dot(h2, packed["w_heads"]) + packed["b_heads"]
    mean = y[:, :latent_dim]
    logvar = y[:, latent_dim:2 * latent_dim]
    logits = y[:, 2 * latent_dim:2 * latent_dim + num_belief_states]
    return mean, logvar, jax.nn.softmax(logits, axis=-1)


# --------------------------------------------------------------------------- main
if __name__ == "__main__":
    action_dim, latent_dim, hidden_dim = 2, 8, 32
    num_agents, num_belief_states = 3, 4
    batch = 2

    key = jax.random.PRNGKey(0)
    kp, k1, k2, k3, k4, k5 = jax.random.split(key, 6)
    params = init_params(kp, action_dim, latent_dim, hidden_dim, num_agents,
                         num_belief_states)

    actions = jax.random.normal(k2, (batch, action_dim * num_agents), dtype=jnp.float32)
    reward = jax.random.normal(k3, (batch,), dtype=jnp.float32)          # 1-D -> unsqueeze(1)
    latent_in = jax.random.normal(k5, (batch, 1, latent_dim), dtype=jnp.float32)  # 3-D -> squeeze(1)

    # --- discrete-signal branch, f32 weights + f32 output (tight correctness) --------
    signal_d = jax.nn.softmax(jax.random.normal(k1, (batch, num_belief_states)), axis=-1)
    nsignal_d = jax.nn.softmax(jax.random.normal(k4, (batch, num_belief_states)), axis=-1)

    packed_f32 = pack_params(params, hidden_dim, latent_dim, num_belief_states,
                             action_dim, num_agents, matmul_dtype=jnp.float32)
    mean, logvar, belief = encoder_forward(signal_d, actions, reward, nsignal_d, latent_in,
                                           packed_f32, latent_dim, num_belief_states)
    jax.block_until_ready((mean, logvar, belief))

    ns, na, nr, nn_, nl = _normalize_inputs(signal_d, actions, reward, nsignal_d, latent_in)
    r_mean, r_logvar, r_belief = _reference_forward(
        ns, na, nr, nn_, nl, packed_f32, False, latent_dim, num_belief_states)

    assert mean.shape == (batch, latent_dim)
    assert logvar.shape == (batch, latent_dim)
    assert belief.shape == (batch, num_belief_states)
    assert jnp.allclose(mean, r_mean, atol=1e-5), "mean mismatch (discrete/f32)"
    assert jnp.allclose(logvar, r_logvar, atol=1e-5), "logvar mismatch (discrete/f32)"
    assert jnp.allclose(belief, r_belief, atol=1e-5), "belief mismatch (discrete/f32)"
    assert jnp.allclose(jnp.sum(belief, axis=-1), 1.0, atol=1e-5), "belief not a distribution"

    # --- continuous-signal branch, bf16 weights + bf16 output (v6e/v7x MXU path) -----
    signal_c = jax.random.normal(k1, (batch, 1), dtype=jnp.float32)
    nsignal_c = jax.random.normal(k4, (batch, 1), dtype=jnp.float32)

    packed_bf16 = pack_params(params, hidden_dim, latent_dim, num_belief_states,
                              action_dim, num_agents, matmul_dtype=jnp.bfloat16)
    m2, l2, b2 = encoder_forward(signal_c, actions, reward, nsignal_c, latent_in,
                                 packed_bf16, latent_dim, num_belief_states,
                                 out_dtype=jnp.bfloat16)
    jax.block_until_ready((m2, l2, b2))

    ns, na, nr, nn_, nl = _normalize_inputs(signal_c, actions, reward, nsignal_c, latent_in)
    rm2, rl2, rb2 = _reference_forward(
        ns, na, nr, nn_, nl, packed_bf16, True, latent_dim, num_belief_states)

    m2f, l2f, b2f = (a.astype(jnp.float32) for a in (m2, l2, b2))
    assert jnp.allclose(m2f, rm2, atol=2e-2, rtol=2e-2), "mean mismatch (continuous/bf16)"
    assert jnp.allclose(l2f, rl2, atol=2e-2, rtol=2e-2), "logvar mismatch (continuous/bf16)"
    assert jnp.allclose(b2f, rb2, atol=2e-2), "belief mismatch (continuous/bf16)"

    print("KERNEL_OK")
</pallas_src>

<mosaic_0001>
module attributes {stable_mosaic.version = 11 : i64} {
  func.func @_encoder_kernel(%arg0: i32, %arg1: memref<8x128xf32, #tpu.memory_space<vmem>>, %arg2: memref<128x128xf32, #tpu.memory_space<vmem>>, %arg3: memref<1x128xf32, #tpu.memory_space<vmem>>, %arg4: memref<128x128xf32, #tpu.memory_space<vmem>>, %arg5: memref<1x128xf32, #tpu.memory_space<vmem>>, %arg6: memref<128x128xf32, #tpu.memory_space<vmem>>, %arg7: memref<1x128xf32, #tpu.memory_space<vmem>>, %arg8: memref<8x128xf32, #tpu.memory_space<vmem>>) attributes {dimension_semantics = [#tpu.dimension_semantics<parallel>], iteration_bounds = array<i64: 1>, scalar_prefetch = 0 : i64, scratch_operands = 0 : i64, tpu.core_type = #tpu.core_type<tc>, window_params = [{transform_indices = @transform_0, window_bounds = array<i64: 8, 128>}, {pipeline_mode = #tpu.pipeline_mode<synchronous>, transform_indices = @transform_1, window_bounds = array<i64: 128, 128>}, {pipeline_mode = #tpu.pipeline_mode<synchronous>, transform_indices = @transform_2, window_bounds = array<i64: 1, 128>}, {pipeline_mode = #tpu.pipeline_mode<synchronous>, transform_indices = @transform_3, window_bounds = array<i64: 128, 128>}, {pipeline_mode = #tpu.pipeline_mode<synchronous>, transform_indices = @transform_4, window_bounds = array<i64: 1, 128>}, {pipeline_mode = #tpu.pipeline_mode<synchronous>, transform_indices = @transform_5, window_bounds = array<i64: 128, 128>}, {pipeline_mode = #tpu.pipeline_mode<synchronous>, transform_indices = @transform_6, window_bounds = array<i64: 1, 128>}, {transform_indices = @transform_7, window_bounds = array<i64: 8, 128>}]} {
    %c0 = arith.constant 0 : index
    %c0_0 = arith.constant 0 : index
    %0 = vector.load %arg1[%c0, %c0_0] : memref<8x128xf32, #tpu.memory_space<vmem>>, vector<8x128xf32>
    %c0_1 = arith.constant 0 : index
    %c0_2 = arith.constant 0 : index
    %1 = vector.load %arg2[%c0_1, %c0_2] : memref<128x128xf32, #tpu.memory_space<vmem>>, vector<128x128xf32>
    %cst = arith.constant dense<0.000000e+00> : vector<8x128xf32>
    %2 = tpu.matmul %0, %1, %cst {dimension_numbers = #tpu.dot_dimension_numbers<[1], [0], [0], [1], [0, 0, 1, 1], [], []>} : vector<8x128xf32>, vector<128x128xf32>, vector<8x128xf32> -> vector<8x128xf32>
    %c0_3 = arith.constant 0 : index
    %c0_4 = arith.constant 0 : index
    %3 = vector.load %arg3[%c0_3, %c0_4] : memref<1x128xf32, #tpu.memory_space<vmem>>, vector<1x128xf32>
    %4 = vector.broadcast %3 : vector<1x128xf32> to vector<8x128xf32>
    %5 = arith.addf %2, %4 : vector<8x128xf32>
    %cst_5 = arith.constant 0.000000e+00 : f32
    %6 = vector.broadcast %cst_5 : f32 to vector<8x128xf32>
    %7 = arith.maximumf %5, %6 : vector<8x128xf32>
    %c0_6 = arith.constant 0 : index
    %c0_7 = arith.constant 0 : index
    %8 = vector.load %arg4[%c0_6, %c0_7] : memref<128x128xf32, #tpu.memory_space<vmem>>, vector<128x128xf32>
    %cst_8 = arith.constant dense<0.000000e+00> : vector<8x128xf32>
    %9 = tpu.matmul %7, %8, %cst_8 {dimension_numbers = #tpu.dot_dimension_numbers<[1], [0], [0], [1], [0, 0, 1, 1], [], []>} : vector<8x128xf32>, vector<128x128xf32>, vector<8x128xf32> -> vector<8x128xf32>
    %c0_9 = arith.constant 0 : index
    %c0_10 = arith.constant 0 : index
    %10 = vector.load %arg5[%c0_9, %c0_10] : memref<1x128xf32, #tpu.memory_space<vmem>>, vector<1x128xf32>
    %11 = vector.broadcast %10 : vector<1x128xf32> to vector<8x128xf32>
    %12 = arith.addf %9, %11 : vector<8x128xf32>
    %cst_11 = arith.constant 0.000000e+00 : f32
    %13 = vector.broadcast %cst_11 : f32 to vector<8x128xf32>
    %14 = arith.maximumf %12, %13 : vector<8x128xf32>
    %c0_12 = arith.constant 0 : index
    %c0_13 = arith.constant 0 : index
    %15 = vector.load %arg6[%c0_12, %c0_13] : memref<128x128xf32, #tpu.memory_space<vmem>>, vector<128x128xf32>
    %cst_14 = arith.constant dense<0.000000e+00> : vector<8x128xf32>
    %16 = tpu.matmul %14, %15, %cst_14 {dimension_numbers = #tpu.dot_dimension_numbers<[1], [0], [0], [1], [0, 0, 1, 1], [], []>} : vector<8x128xf32>, vector<128x128xf32>, vector<8x128xf32> -> vector<8x128xf32>
    %c0_15 = arith.constant 0 : index
    %c0_16 = arith.constant 0 : index
    %17 = vector.load %arg7[%c0_15, %c0_16] : memref<1x128xf32, #tpu.memory_space<vmem>>, vector<1x128xf32>
    %18 = vector.broadcast %17 : vector<1x128xf32> to vector<8x128xf32>
    %19 = arith.addf %16, %18 : vector<8x128xf32>
    %20 = tpu.iota {dimensions = array<i32: 1>} : vector<1x128xi32>
    %c16_i32 = arith.constant 16 : i32
    %21 = vector.broadcast %c16_i32 : i32 to vector<1x128xi32>
    %22 = arith.cmpi sge, %20, %21 : vector<1x128xi32>
    %c20_i32 = arith.constant 20 : i32
    %23 = vector.broadcast %c20_i32 : i32 to vector<1x128xi32>
    %24 = arith.cmpi slt, %20, %23 : vector<1x128xi32>
    %25 = arith.andi %22, %24 : vector<1x128xi1>
    %cst_17 = arith.constant -1.000000e+30 : f32
    %26 = vector.shape_cast %25 : vector<1x128xi1> to vector<1x128xi1>
    %27 = vector.broadcast %26 : vector<1x128xi1> to vector<8x128xi1>
    %28 = vector.broadcast %cst_17 : f32 to vector<8x128xf32>
    %29 = arith.select %27, %19, %28 : vector<8x128xi1>, vector<8x128xf32>
    %cst_18 = arith.constant dense<0xFF800000> : vector<8xf32>
    %30 = vector.multi_reduction <maximumf>, %29, %cst_18 [1] : vector<8x128xf32> to vector<8xf32>
    %31 = vector.shape_cast %30 : vector<8xf32> to vector<8x1xf32>
    %32 = vector.broadcast %31 : vector<8x1xf32> to vector<8x128xf32>
    %33 = arith.subf %29, %32 : vector<8x128xf32>
    %34 = math.exp %33 : vector<8x128xf32>
    %cst_19 = arith.constant dense<0.000000e+00> : vector<8xf32>
    %35 = vector.multi_reduction <add>, %34, %cst_19 [1] : vector<8x128xf32> to vector<8xf32>
    %36 = vector.shape_cast %35 : vector<8xf32> to vector<8x1xf32>
    %37 = vector.broadcast %36 : vector<8x1xf32> to vector<8x128xf32>
    %38 = arith.divf %34, %37 : vector<8x128xf32>
    %39 = vector.shape_cast %25 : vector<1x128xi1> to vector<1x128xi1>
    %40 = vector.broadcast %39 : vector<1x128xi1> to vector<8x128xi1>
    %41 = arith.select %40, %38, %19 : vector<8x128xi1>, vector<8x128xf32>
    %c0_20 = arith.constant 0 : index
    %c0_21 = arith.constant 0 : index
    %42 = vector.load %arg8[%c0_20, %c0_21] : memref<8x128xf32, #tpu.memory_space<vmem>>, vector<8x128xf32>
    tpu.vector_store %arg8[%c0_20, %c0_21], %41 {strides = array<i32>} : memref<8x128xf32, #tpu.memory_space<vmem>>, vector<8x128xf32>,
    return
  }
  func.func @transform_0(%arg0: i32) -> (i32, i32) {
    %c0_i32 = arith.constant 0 : i32
    %c0_i32_0 = arith.constant 0 : i32
    return %arg0, %c0_i32 : i32, i32
  }
  func.func @transform_1(%arg0: i32) -> (i32, i32) {
    %c0_i32 = arith.constant 0 : i32
    %c0_i32_0 = arith.constant 0 : i32
    %c0_i32_1 = arith.constant 0 : i32
    return %c0_i32, %c0_i32_0 : i32, i32
  }
  func.func @transform_2(%arg0: i32) -> (i32, i32) {
    %c0_i32 = arith.constant 0 : i32
    %c0_i32_0 = arith.constant 0 : i32
    %c0_i32_1 = arith.constant 0 : i32
    return %c0_i32, %c0_i32_0 : i32, i32
  }
  func.func @transform_3(%arg0: i32) -> (i32, i32) {
    %c0_i32 = arith.constant 0 : i32
    %c0_i32_0 = arith.constant 0 : i32
    %c0_i32_1 = arith.constant 0 : i32
    return %c0_i32, %c0_i32_0 : i32, i32
  }
  func.func @transform_4(%arg0: i32) -> (i32, i32) {
    %c0_i32 = arith.constant 0 : i32
    %c0_i32_0 = arith.constant 0 : i32
    %c0_i32_1 = arith.constant 0 : i32
    return %c0_i32, %c0_i32_0 : i32, i32
  }
  func.func @transform_5(%arg0: i32) -> (i32, i32) {
    %c0_i32 = arith.constant 0 : i32
    %c0_i32_0 = arith.constant 0 : i32
    %c0_i32_1 = arith.constant 0 : i32
    return %c0_i32, %c0_i32_0 : i32, i32
  }
  func.func @transform_6(%arg0: i32) -> (i32, i32) {
    %c0_i32 = arith.constant 0 : i32
    %c0_i32_0 = arith.constant 0 : i32
    %c0_i32_1 = arith.constant 0 : i32
    return %c0_i32, %c0_i32_0 : i32, i32
  }
  func.func @transform_7(%arg0: i32) -> (i32, i32) {
    %c0_i32 = arith.constant 0 : i32
    %c0_i32_0 = arith.constant 0 : i32
    return %arg0, %c0_i32 : i32, i32
  }
}

</mosaic_0001>

<bundles_post_ra>
// kernel: tpu_custom_call.1
= control target key start
LH: loop header
LB: loop body
LE: loop exit
PB: predicated region body
PF: predicated region fallthrough
CT: control target
= control target key end

     0   :  { %12 = vsyncpa [#allocation3], 0  ;;  %s927_s0 = inlined_call_operand.hbm [shape: f32[8,128], index: 0, kind: input, shape index: {}]   ;;  %s928_s1 = inlined_call_operand.hbm [shape: f32[128,128], index: 1, kind: input, shape index: {}]   ;;  %s929_s2 = inlined_call_operand.vmem [shape: f32[1,128], index: 2, kind: input, shape index: {}]   ;;  %s930_s3 = inlined_call_operand.hbm [shape: f32[128,128], index: 3, kind: input, shape index: {}]   ;;  %s931_s4 = inlined_call_operand.vmem [shape: f32[1,128], index: 4, kind: input, shape index: {}]   ;;  %s932_s5 = inlined_call_operand.hbm [shape: f32[128,128], index: 5, kind: input, shape index: {}]   ;;  %s933_s6 = inlined_call_operand.vmem [shape: f32[1,128], index: 6, kind: input, shape index: {}]   ;;  %s934_s7 = inlined_call_operand.hbm [shape: f32[8,128], index: 7, kind: output, shape index: {}]  }
   0x1   :  { %13 = vsyncpa [#allocation6], 0 }
   0x2   :  { %14 = vsyncpa [#allocation9], 0 }
   0x3   :  { %15 = vsyncpa [#allocation4], 0  ;;  %s761_s24 = smov [#allocation5]   ;;  %s643_s28 = scalar_lea.hbm %s928_s1, 2048 }
   0x4   :  { %s31_s25 = sshll.u32 %s761_s24, 4  ;;  %p644_p0 = scmp.ne.s32.totalorder %s928_s1, %s643_s28  ;;  %s32_s25 = int_to_ptr.vmem [resolvable:$true] %s31_s25 }
   0x5   :  { %p647_p1 = scmp.lt.u32.totalorder %s643_s28, %s928_s1 }
   0x7   :  { %p649_p2 = pnand %p647_p1, %p644_p0 }
   0x9   :  { %652 = shalt.err (!%p649_p2)
}
   0xa   :  { %s653_s10 = scalar_lea.vmem %s32_s25, 2048  ;;  %p658_p4 = scmp.lt.s32.totalorder %s32_s25, %s32_s25 }
   0xb   :  { %p654_p3 = scmp.ne.s32.totalorder %s32_s25, %s653_s10  ;;  %p659_p5 = scmp.lt.s32.totalorder %s653_s10, %s653_s10 }
   0xd   :  { %p660_p6 = por %p659_p5, %p658_p4 }
   0xf   :  { %p661_p7 = pnand %p660_p6, %p654_p3 }
  0x11   :  { %664 = shalt.err (!%p661_p7)
}
  0x12   :  { %s762_s11 = smov 128   ;;  %s763_s12 = smov 8  }
  0x13   :  { %37 = dma.hbm_to_vmem [thread:$0]  %s928_s1, 2048, %s32_s25, [#allocation6], %s762_s11, %s762_s11, %s763_s12  }
  0x14   :  { %s764_s15 = smov [#allocation2]   ;;  %s765_s17 = smov [#allocation7]  }
  0x15   :  { %s22_s16 = sshll.u32 %s764_s15, 4  ;;  %s45_s18 = sshll.u32 %s765_s17, 4  ;;  %s23_s16 = int_to_ptr.vmem [resolvable:$true] %s22_s16  ;;  %s46_s18 = int_to_ptr.vmem [resolvable:$true] %s45_s18 }
  0x16   :  { %s665_s21 = scalar_lea.hbm %s927_s0, 128 }
  0x17   :  { %p666_p8 = scmp.ne.s32.totalorder %s927_s0, %s665_s21  ;;  %p669_p9 = scmp.lt.u32.totalorder %s665_s21, %s927_s0 }
  0x19   :  { %p671_p10 = pnand %p669_p9, %p666_p8 }
  0x1b   :  { %674 = shalt.err (!%p671_p10)
}
  0x1c   :  { %s675_s1 = scalar_lea.vmem %s23_s16, 128  ;;  %p680_p12 = scmp.lt.s32.totalorder %s23_s16, %s23_s16 }
  0x1d   :  { %p676_p11 = scmp.ne.s32.totalorder %s23_s16, %s675_s1  ;;  %p681_p13 = scmp.lt.s32.totalorder %s675_s1, %s675_s1 }
  0x1f   :  { %p682_p0 = por %p681_p13, %p680_p12 }
  0x21   :  { %p683_p1 = pnand %p682_p0, %p676_p11 }
  0x23   :  { %686 = shalt.err (!%p683_p1)
}
  0x24   :  { %25 = dma.hbm_to_vmem [thread:$0]  %s927_s0, 128, %s23_s16, [#allocation3]  }
  0x25   :  { %s687_s30 = scalar_lea.hbm %s930_s3, 2048 }
  0x26   :  { %p688_p2 = scmp.ne.s32.totalorder %s930_s3, %s687_s30  ;;  %p691_p3 = scmp.lt.u32.totalorder %s687_s30, %s930_s3 }
  0x28   :  { %p693_p4 = pnand %p691_p3, %p688_p2 }
  0x2a   :  { %696 = shalt.err (!%p693_p4)
}
  0x2b   :  { %s697_s14 = scalar_lea.vmem %s46_s18, 2048  ;;  %p702_p6 = scmp.lt.s32.totalorder %s46_s18, %s46_s18 }
  0x2c   :  { %p698_p5 = scmp.ne.s32.totalorder %s46_s18, %s697_s14  ;;  %p703_p7 = scmp.lt.s32.totalorder %s697_s14, %s697_s14 }
  0x2e   :  { %p704_p8 = por %p703_p7, %p702_p6 }
  0x30   :  { %p705_p9 = pnand %p704_p8, %p698_p5 }
  0x32   :  { %708 = shalt.err (!%p705_p9)
}
  0x33   :  { %51 = dma.hbm_to_vmem [thread:$0]  %s930_s3, 2048, %s46_s18, [#allocation6], %s762_s11, %s762_s11, %s763_s12  }
  0x34   :  { %s766_s16 = smov [#allocation8]   ;;  %s709_s21 = scalar_lea.hbm %s932_s5, 2048 }
  0x35   :  { %s59_s17 = sshll.u32 %s766_s16, 4  ;;  %p710_p10 = scmp.ne.s32.totalorder %s932_s5, %s709_s21  ;;  %s60_s17 = int_to_ptr.vmem [resolvable:$true] %s59_s17 }
  0x36   :  { %p713_p11 = scmp.lt.u32.totalorder %s709_s21, %s932_s5 }
  0x38   :  { %p715_p12 = pnand %p713_p11, %p710_p10 }
  0x3a   :  { %718 = shalt.err (!%p715_p12)
}
  0x3b   :  { %s719_s1 = scalar_lea.vmem %s60_s17, 2048  ;;  %p724_p0 = scmp.lt.s32.totalorder %s60_s17, %s60_s17 }
  0x3c   :  { %p720_p13 = scmp.ne.s32.totalorder %s60_s17, %s719_s1  ;;  %p725_p1 = scmp.lt.s32.totalorder %s719_s1, %s719_s1 }
  0x3e   :  { %p726_p2 = por %p725_p1, %p724_p0 }
  0x40   :  { %p727_p3 = pnand %p726_p2, %p720_p13 }
  0x42   :  { %730 = shalt.err (!%p727_p3)
}
  0x43   :  { %65 = dma.hbm_to_vmem [thread:$0]  %s932_s5, 2048, %s60_s17, [#allocation9], %s762_s11, %s762_s11, %s763_s12  }
  0x44   :  { %753 = dma.done.wait [#allocation3], 128  }
  0x45   :  { %754 = vsyncadd [#allocation3], 4294967168 }
  0x46   :  { %755 = dma.done.wait [#allocation6], 4096  }
  0x47   :  { %756 = vsyncadd [#allocation6], 4294963200 }
  0x48   :  { %757 = dma.done.wait [#allocation9], 2048  }
  0x49   :  { %758 = vsyncadd [#allocation9], 4294965248  ;;  %v767_v0 = vmov 0.0|0.0   ;;  %vm768_vm0 = vmmov 0   ;;  %v769_v1 = vmov 0.0   ;;  %v81_v2 = vld [vmem:[#allocation5] sm:$0xff] }
  0x4a   :  { %557 = vmatprep.subr.bf16.mxu0 %v767_v0  ;;  %484 = vmatprep.mubr.msk.f32.mxu0 %vm768_vm0, %v769_v1  ;;  %v82_v3 = vld [vmem:[#allocation5 + $0x8] sm:$0xff]  ;;  %v83_v4 = vld [vmem:[#allocation5 + $0x10] sm:$0xff]  ;;  %v84_v6 = vld [vmem:[#allocation5 + $0x18] sm:$0xff] }
  0x4b   :  { %581 = vmatprep.subr.bf16.mxu1 %v767_v0  ;;  %519 = vmatprep.mubr.msk.f32.mxu1 %vm768_vm0, %v769_v1  ;;  %v558_v5 = vpack.c.bf16 %v82_v3, %v81_v2  ;;  %v561_v7 = vpack.c.bf16 %v84_v6, %v83_v4  ;;  %v85_v8 = vld [vmem:[#allocation5 + $0x20] sm:$0xff]  ;;  %v86_v9 = vld [vmem:[#allocation5 + $0x28] sm:$0xff]  ;;  %v177_v12 = vld [vmem:[#allocation7 + $0x10] sm:$0xff] }
  0x4c   :  { %v175_v10 = vld [vmem:[#allocation7] sm:$0xff]  ;;  %v176_v11 = vld [vmem:[#allocation7 + $0x8] sm:$0xff]  ;;  %v178_v13 = vld [vmem:[#allocation7 + $0x18] sm:$0xff]  ;;  %v564_v14 = vpack.c.bf16 %v86_v9, %v85_v8 }
  0x4d   :  { %559 = vmatpush3.bf16.msra.mxu0 %v558_v5  ;;  %v582_v15 = vpack.c.bf16 %v176_v11, %v175_v10  ;;  %v87_v16 = vld [vmem:[#allocation5 + $0x30] sm:$0xff]  ;;  %v88_v17 = vld [vmem:[#allocation5 + $0x38] sm:$0xff]  ;;  %v585_v18 = vpack.c.bf16 %v178_v13, %v177_v12  ;;  %v179_v19 = vld [vmem:[#allocation7 + $0x20] sm:$0xff] }
  0x4e   :  { %560 = vmatprep.subr.bf16.mxu0 %v767_v0  ;;  %v180_v20 = vld [vmem:[#allocation7 + $0x28] sm:$0xff]  ;;  %v567_v21 = vpack.c.bf16 %v88_v17, %v87_v16  ;;  %v89_v22 = vld [vmem:[#allocation5 + $0x40] sm:$0xff]  ;;  %v181_v25 = vld [vmem:[#allocation7 + $0x30] sm:$0xff] }
  0x4f   :  { %583 = vmatpush3.bf16.msra.mxu1 %v582_v15  ;;  %v90_v23 = vld [vmem:[#allocation5 + $0x48] sm:$0xff]  ;;  %v588_v24 = vpack.c.bf16 %v180_v20, %v179_v19  ;;  %v182_v26 = vld [vmem:[#allocation7 + $0x38] sm:$0xff]  ;;  %v91_v28 = vld [vmem:[#allocation5 + $0x50] sm:$0xff] }
  0x50   :  { %584 = vmatprep.subr.bf16.mxu1 %v767_v0  ;;  %v570_v27 = vpack.c.bf16 %v90_v23, %v89_v22  ;;  %v92_v29 = vld [vmem:[#allocation5 + $0x58] sm:$0xff]  ;;  %v591_v30 = vpack.c.bf16 %v182_v26, %v181_v25  ;;  %v183_v31 = vld [vmem:[#allocation7 + $0x40] sm:$0xff]  ;;  %v184_v32 = vld [vmem:[#allocation7 + $0x48] sm:$0xff] }
  0x51   :  { %562 = vmatpush3.bf16.msra.mxu0 %v561_v7  ;;  %v573_v33 = vpack.c.bf16 %v92_v29, %v91_v28  ;;  %v93_v34 = vld [vmem:[#allocation5 + $0x60] sm:$0xff]  ;;  %v94_v35 = vld [vmem:[#allocation5 + $0x68] sm:$0xff]  ;;  %v594_v36 = vpack.c.bf16 %v184_v32, %v183_v31  ;;  %v185_v37 = vld [vmem:[#allocation7 + $0x50] sm:$0xff] }
  0x52   :  { %563 = vmatprep.subr.bf16.mxu0 %v767_v0  ;;  %v186_v38 = vld [vmem:[#allocation7 + $0x58] sm:$0xff]  ;;  %v576_v39 = vpack.c.bf16 %v94_v35, %v93_v34  ;;  %v95_v40 = vld [vmem:[#allocation5 + $0x70] sm:$0xff]  ;;  %v187_v43 = vld [vmem:[#allocation7 + $0x60] sm:$0xff] }
  0x53   :  { %586 = vmatpush3.bf16.msra.mxu1 %v585_v18  ;;  %v96_v41 = vld [vmem:[#allocation5 + $0x78] sm:$0xff]  ;;  %v597_v42 = vpack.c.bf16 %v186_v38, %v185_v37  ;;  %v188_v44 = vld [vmem:[#allocation7 + $0x68] sm:$0xff]  ;;  %v189_v48 = vld [vmem:[#allocation7 + $0x70] sm:$0xff] }
  0x54   :  { %587 = vmatprep.subr.bf16.mxu1 %v767_v0  ;;  %v579_v45 = vpack.c.bf16 %v96_v41, %v95_v40  ;;  %v600_v46 = vpack.c.bf16 %v188_v44, %v187_v43  ;;  %v80_v47 = vld [vmem:[#allocation2] sm:$0xff]  ;;  %v269_v51 = vld [vmem:[#allocation8] sm:$0xff]  ;;  %v270_v52 = vld [vmem:[#allocation8 + $0x8] sm:$0xff] }
  0x55   :  { %565 = vmatpush3.bf16.msra.mxu0 %v564_v14  ;;  %v190_v49 = vld [vmem:[#allocation7 + $0x78] sm:$0xff]  ;;  %v271_v53 = vld [vmem:[#allocation8 + $0x10] sm:$0xff]  ;;  %v606_v54 = vpack.c.bf16 %v270_v52, %v269_v51  ;;  %v273_v57 = vld [vmem:[#allocation8 + $0x20] sm:$0xff] }
  0x56   :  { %566 = vmatprep.subr.bf16.mxu0 %v767_v0  ;;  %v603_v50 = vpack.c.bf16 %v190_v49, %v189_v48  ;;  %v272_v55 = vld [vmem:[#allocation8 + $0x18] sm:$0xff]  ;;  %v274_v58 = vld [vmem:[#allocation8 + $0x28] sm:$0xff]  ;;  %v275_v60 = vld [vmem:[#allocation8 + $0x30] sm:$0xff] }
  0x57   :  { %589 = vmatpush3.bf16.msra.mxu1 %v588_v24  ;;  %v609_v56 = vpack.c.bf16 %v272_v55, %v271_v53  ;;  %v612_v59 = vpack.c.bf16 %v274_v58, %v273_v57  ;;  %v276_v61 = vld [vmem:[#allocation8 + $0x38] sm:$0xff]  ;;  %v277_v63 = vld [vmem:[#allocation8 + $0x40] sm:$0xff]  ;;  %v279_v3 = vld [vmem:[#allocation8 + $0x50] sm:$0xff] }
  0x58   :  { %590 = vmatprep.subr.bf16.mxu1 %v767_v0  ;;  %v615_v62 = vpack.c.bf16 %v276_v61, %v275_v60  ;;  %v280_v4 = vld [vmem:[#allocation8 + $0x58] sm:$0xff]  ;;  %v281_v6 = vld [vmem:[#allocation8 + $0x60] sm:$0xff]  ;;  %v282_v7 = vld [vmem:[#allocation8 + $0x68] sm:$0xff] }
  0x59   :  { %568 = vmatpush3.bf16.msra.mxu0 %v567_v21  ;;  %v621_v5 = vpack.c.bf16 %v280_v4, %v279_v3  ;;  %v624_v8 = vpack.c.bf16 %v282_v7, %v281_v6  ;;  %v398_v9 = vld [vmem:[%s929_s2] ss:$0 sm:$0xff]  ;;  %v283_v14 = vld [vmem:[#allocation8 + $0x70] sm:$0xff]  ;;  %v362_v21 = vlaneseq }
  0x5a   :  { %569 = vmatprep.subr.bf16.mxu0 %v767_v0  ;;  %v284_v15 = vld [vmem:[#allocation8 + $0x78] sm:$0xff] }
  0x5b   :  { %592 = vmatpush3.bf16.msra.mxu1 %v591_v30  ;;  %v627_v16 = vpack.c.bf16 %v284_v15, %v283_v14  ;;  %v399_v17 = vld [vmem:[%s931_s4] ss:$0 sm:$0xff]  ;;  %v363_v22 = vand.u32 127, %v362_v21  ;;  %s770_s4 = smov [#allocation10]  }
  0x5c   :  { %593 = vmatprep.subr.bf16.mxu1 %v767_v0  ;;  %v400_v23 = vld [vmem:[%s933_s6] ss:$0 sm:$0xff]  ;;  %s387_s6 = sshll.u32 %s770_s4, 4  ;;  %s388_s6 = int_to_ptr.vmem [resolvable:$true] %s387_s6 }
  0x5d   :  { %571 = vmatpush3.bf16.msra.mxu0 %v570_v27  ;;  %vm364_vm1 = vcmp.ge.s32.totalorder %v363_v22, 16  ;;  %vm365_vm2 = vcmp.lt.s32.totalorder %v363_v22, 20  ;;  %s731_s28 = scalar_lea.vmem %s388_s6, 128  ;;  %p736_p5 = scmp.lt.s32.totalorder %s388_s6, %s388_s6 }
  0x5e   :  { %572 = vmatprep.subr.bf16.mxu0 %v767_v0  ;;  %vm907_vm3 = vmand %vm364_vm1, %vm365_vm2  ;;  %p732_p4 = scmp.ne.s32.totalorder %s388_s6, %s731_s28  ;;  %p737_p6 = scmp.lt.s32.totalorder %s731_s28, %s731_s28 }
  0x5f   :  { %595 = vmatpush3.bf16.msra.mxu1 %v594_v36 }
  0x60   :  { %596 = vmatprep.subr.bf16.mxu1 %v767_v0  ;;  %p738_p7 = por %p737_p6, %p736_p5 }
  0x61   :  { %574 = vmatpush3.bf16.msra.mxu0 %v573_v33 }
  0x62   :  { %575 = vmatprep.subr.bf16.mxu0 %v767_v0  ;;  %p739_p8 = pnand %p738_p7, %p732_p4 }
  0x63   :  { %598 = vmatpush3.bf16.msra.mxu1 %v597_v42 }
  0x64   :  { %599 = vmatprep.subr.bf16.mxu1 %v767_v0 }
  0x65   :  { %577 = vmatpush3.bf16.msra.mxu0 %v576_v39 }
  0x66   :  { %578 = vmatprep.subr.bf16.mxu0 %v767_v0 }
  0x67   :  { %601 = vmatpush3.bf16.msra.mxu1 %v600_v46 }
  0x68   :  { %602 = vmatprep.subr.bf16.mxu1 %v767_v0 }
  0x69   :  { %580 = vmatpush3.bf16.msra.mxu0 %v579_v45 }
  0x6a   :  { %605 = vmatprep.subr.bf16.mxu0 %v767_v0 }
  0x6b   :  { %604 = vmatpush3.bf16.msra.mxu1 %v603_v50 }
  0x6c   :  { %485 = vmatmul.mubr.f32.vlgmr.msra.gmra.mrb[0].mxu0 %v80_v47 }
  0x6d   :  { %554 = vmatprep.mubr.msk.f32.mxu0 %vm768_vm0, %v769_v1  ;;  %607 = vmatpush3.bf16.msra.mxu0 %v606_v54  ;;  %v278_v1 = vld [vmem:[#allocation8 + $0x48] sm:$0xff] }
  0x6e   :  { %608 = vmatprep.subr.bf16.mxu0 %v767_v0  ;;  %v618_v2 = vpack.c.bf16 %v278_v1, %v277_v63 }
  0x71   :  { %610 = vmatpush3.bf16.msra.mxu0 %v609_v56 }
  0x72   :  { %611 = vmatprep.subr.bf16.mxu0 %v767_v0 }
  0x75   :  { %613 = vmatpush3.bf16.msra.mxu0 %v612_v59 }
  0x76   :  { %614 = vmatprep.subr.bf16.mxu0 %v767_v0 }
  0x79   :  { %616 = vmatpush3.bf16.msra.mxu0 %v615_v62 }
  0x7a   :  { %617 = vmatprep.subr.bf16.mxu0 %v767_v0 }
  0x7d   :  { %619 = vmatpush3.bf16.msra.mxu0 %v618_v2 }
  0x7e   :  { %620 = vmatprep.subr.bf16.mxu0 %v767_v0 }
  0x81   :  { %622 = vmatpush3.bf16.msra.mxu0 %v621_v5 }
  0x82   :  { %623 = vmatprep.subr.bf16.mxu0 %v767_v0 }
  0x85   :  { %625 = vmatpush3.bf16.msra.mxu0 %v624_v8 }
  0x86   :  { %626 = vmatprep.subr.bf16.mxu0 %v767_v0 }
  0x89   :  { %628 = vmatpush3.bf16.msra.mxu0 %v627_v16 }
 0x13f   :  { %v170_v10 = vpop.f32.mrb[0].mxu0 }
 0x140   :  { %v171_v11 = vadd.f32 %v398_v9, %v170_v10  ;;  %v486_v12 = vpop.f32.mrb[1].mxu0 }
 0x142   :  { %v174_v13 = vmax.f32 %v171_v11, 0.0 }
 0x144   :  { %520 = vmatmul.mubr.f32.vlgmr.msra.gmra.mrb[0].mxu1 %v174_v13 }
 0x217   :  { %v264_v18 = vpop.f32.mrb[0].mxu1 }
 0x218   :  { %v265_v19 = vadd.f32 %v399_v17, %v264_v18  ;;  %v521_v0 = vpop.f32.mrb[1].mxu1 }
 0x21a   :  { %v268_v20 = vmax.f32 %v265_v19, 0.0 }
 0x21c   :  { %555 = vmatmul.mubr.f32.vlgmr.msra.gmra.mrb[2].mxu0 %v268_v20 }
 0x2ef   :  { %v358_v24 = vpop.f32.mrb[2].mxu0 }
 0x2f0   :  { %v359_v26 = vadd.f32 %v400_v23, %v358_v24  ;;  %v556_v27 = vpop.f32.mrb[3].mxu0 }
 0x2f2   :  { %v369_v28 = vsel %vm907_vm3, %v359_v26, -1e+30 }
 0x2f3   :  { %370 = vmax.xlane.f32.xlu0 %v369_v28 }
 0x380   :  { %v371_v29 = vpop.xlane.xlu0 %370 }
 0x381   :  { %v372_v30 = vsub.f32 %v369_v28, %v371_v29 }
 0x383   :  { %v373_v31 = vmul.f32 1.442695, %v372_v30 }
 0x385   :  { %639 = vpow2.f32 %v373_v31 }
 0x38f   :  { %v640_v32 = vpop.eup %639 }
 0x390   :  { %375 = vadd.xlane.f32.xlu0 %v640_v32 }
 0x41d   :  { %v376_v33 = vpop.xlane.xlu0 %375 }
 0x41e   :  { %641 = vrcp.f32 %v376_v33 }
 0x428   :  { %v642_v34 = vpop.eup %641 }
 0x429   :  { %v378_v35 = vmul.f32 %v642_v34, %v640_v32 }
 0x42b   :  { %v379_v36 = vsel %vm907_vm3, %v378_v35, %v359_v26 }
 0x42c   :  { %380 = vst [vmem:[#allocation10] sm:$0xff] %v379_v36 }
 0x42d   :  { %742 = shalt.err (!%p739_p8)
}
 0x42e   :  { %s743_s8 = scalar_lea.hbm %s934_s7, 128 }
 0x42f   :  { %p744_p9 = scmp.ne.s32.totalorder %s934_s7, %s743_s8  ;;  %p747_p10 = scmp.lt.u32.totalorder %s743_s8, %s934_s7 }
 0x431   :  { %p749_p11 = pnand %p747_p10, %p744_p9 }
 0x433   :  { %752 = shalt.err (!%p749_p11)
}
 0x434   :  { %390 = dma.vmem_to_hbm [thread:$0]  %s388_s6, 128, %s934_s7, [#allocation4]  }
 0x435   :  { %759 = dma.done.wait [#allocation4], 128  }
 0x436   :  { %760 = vsyncadd [#allocation4], 4294967168 }
 0x437   :  { %394 = vsyncpa [#allocation3], 1 }
 0x438   :  { %395 = vsyncpa [#allocation6], 1 }
 0x439   :  { %396 = vsyncpa [#allocation9], 1 }
 0x43a   :  { %397 = vsyncpa [#allocation4], 1 }

</bundles_post_ra>
